<compile_context>
chip_gen: v7x
topology: tpu7x:2x2x1
jax: 0.10.0
libtpu: 0.0.40
codegen_flags: <defaults>
</compile_context>

<pallas_src>
import functools

import jax
import jax.numpy as jnp
from jax import lax
from jax.experimental import pallas as pl
from jax.experimental.pallas import tpu as pltpu

INPUT_DIM = 5
# encoder: 5 -> 64 -> 128 -> 256 ; decoder: 256 -> 128 -> 64 -> 5
LAYER_DIMS = [INPUT_DIM, 64, 128, 256, 128, 64, INPUT_DIM]
LANE = 128  # TPU lane width; batch tiles are multiples of this


def _mlp_kernel(x_ref,
                w1, b1, w2, b2, w3, b3,   # encoder weights (out, in) bf16, biases (out, 1) f32
                w4, b4, w5, b5, w6, b6,   # decoder
                o_ref):
    # x block is (tile_b, 5) in PyTorch-native layout.  Fold the transpose into the first
    # matmul (NT dot): contract dim 1 of W1 with dim 1 of the x tile -> (64, tile_b).
    # From there every activation is lane-dense (feature, batch).
    xb = x_ref[...].astype(jnp.bfloat16)
    h = lax.dot_general(w1[...], xb, (((1,), (1,)), ((), ())),
                        preferred_element_type=jnp.float32)
    h = jnp.maximum(h + b1[...], 0.0)

    def layer(w, b, h_f32):
        # bf16 operands on the MXU, f32 accumulation; bias-add stays in f32.
        return jnp.dot(w[...], h_f32.astype(jnp.bfloat16),
                       preferred_element_type=jnp.float32) + b[...]

    # encoder (remaining): Linear -> ReLU (x2)
    h = jnp.maximum(layer(w2, b2, h), 0.0)
    h = jnp.maximum(layer(w3, b3, h), 0.0)
    # decoder: Linear -> ReLU, Linear -> ReLU, Linear -> Tanh
    h = jnp.maximum(layer(w4, b4, h), 0.0)
    h = jnp.maximum(layer(w5, b5, h), 0.0)
    h = jnp.tanh(layer(w6, b6, h))

    o_ref[...] = h.astype(o_ref.dtype)


def init_params(key):
    """PyTorch-style Linear init U(-1/sqrt(fan_in), 1/sqrt(fan_in)).

    Weights stored PyTorch-native as (out, in); biases as (out, 1) so they broadcast over
    the lane (batch) axis inside the kernel.
    """
    params = []
    for fan_in, fan_out in zip(LAYER_DIMS[:-1], LAYER_DIMS[1:]):
        key, kw, kb = jax.random.split(key, 3)
        bound = 1.0 / (fan_in ** 0.5)
        w = jax.random.uniform(kw, (fan_out, fan_in), jnp.float32, -bound, bound)
        b = jax.random.uniform(kb, (fan_out, 1), jnp.float32, -bound, bound)
        params.append((w, b))
    return params


def _round_up(n, m):
    return ((n + m - 1) // m) * m


def _cdiv(n, m):
    return (n + m - 1) // m


@functools.partial(jax.jit, static_argnames=("tile_b",))
def advanced_voice_converter(x, params, tile_b=4096):
    """x: (B, INPUT_DIM) float32 -> (B, INPUT_DIM). Any batch size B is accepted."""
    B, F = x.shape
    assert F == INPUT_DIM

    # Batch tiling:
    #  * tile capped at tile_b (multiple of 128, large to amortize grid-step overhead),
    #  * at least 2 grid steps whenever the padded batch allows it, so the "parallel"
    #    axis shards across both TensorCores on v7x,
    #  * tiles balanced across steps so the last tile is nearly full (minimal pad compute).
    tile_b = max(LANE, _round_up(tile_b, LANE))
    bp_min = _round_up(B, LANE)
    n_steps = max(2 if bp_min >= 2 * LANE else 1, _cdiv(bp_min, tile_b))
    eff_tile = _round_up(_cdiv(bp_min, n_steps), LANE)
    Bp = _round_up(B, eff_tile)
    grid = Bp // eff_tile

    # Only row padding of x (no wrapper-side transpose; that is fused into the kernel).
    if Bp != B:
        x = jnp.pad(x, ((0, Bp - B), (0, 0)))

    # Weights as bf16 MXU operands; biases stay f32 (added on the f32 accumulator).
    flat = []
    for w, b in params:
        flat.append(w.astype(jnp.bfloat16))
        flat.append(b.astype(jnp.float32))

    x_spec = pl.BlockSpec((eff_tile, F), lambda i: (i, 0))
    o_spec = pl.BlockSpec((F, eff_tile), lambda i: (0, i))
    # Weights/biases (~0.5 MB total incl. lane padding) are loaded as full-array blocks,
    # resident in VMEM for every grid step (constant index_map).
    param_specs = []
    for w, b in params:
        param_specs.append(pl.BlockSpec(w.shape, lambda i: (0, 0)))
        param_specs.append(pl.BlockSpec(b.shape, lambda i: (0, 0)))

    out_t = pl.pallas_call(
        _mlp_kernel,
        out_shape=jax.ShapeDtypeStruct((F, Bp), x.dtype),
        grid_spec=pltpu.PrefetchScalarGridSpec(
            num_scalar_prefetch=0,
            grid=(grid,),
            in_specs=[x_spec] + param_specs,
            out_specs=o_spec,
        ),
        compiler_params=pltpu.CompilerParams(
            # Batch axis is embarrassingly parallel -> shards across TCs on v7x megacore.
            dimension_semantics=("parallel",),
            # Generation-safe scoped VMEM (<= physical on v5e/v6e/v7x); tile_b=4096 with
            # bf16 dot operands keeps peak VMEM well under this.
            vmem_limit_bytes=32 * 1024 * 1024,
        ),
    )(x, *flat)

    # Drop the batch padding and return to PyTorch's (B, F) layout (output kept lane-dense
    # inside the kernel; this small transpose is the only wrapper-side layout op left).
    return jnp.transpose(out_t[:, :B])


def _reference_f32(x, params):
    """Pure-f32 reference matching the PyTorch module semantics."""
    h = x
    for idx, (w, b) in enumerate(params):
        h = h @ w.T + b[:, 0]
        h = jnp.maximum(h, 0.0) if idx < len(params) - 1 else jnp.tanh(h)
    return h


def _reference_bf16(x, params):
    """Precision-matched reference: bf16 dot operands, f32 accumulation, f32 elementwise."""
    h = x
    for idx, (w, b) in enumerate(params):
        h = jnp.dot(h.astype(jnp.bfloat16), w.astype(jnp.bfloat16).T,
                    preferred_element_type=jnp.float32) + b[:, 0]
        h = jnp.maximum(h, 0.0) if idx < len(params) - 1 else jnp.tanh(h)
    return h


if __name__ == "__main__":
    key = jax.random.PRNGKey(0)
    kx, kp = jax.random.split(key)
    params = init_params(kp)

    # Small deterministic batches; 37 exercises row padding, 300 exercises the >=2-step
    # (megacore-friendly) grid path.
    for B in (16, 37, 300):
        kx, k = jax.random.split(kx)
        x = jax.random.normal(k, (B, INPUT_DIM), jnp.float32)
        out = jax.block_until_ready(advanced_voice_converter(x, params))
        assert out.shape == (B, INPUT_DIM)
        # Tight check against a precision-matched reference (validates kernel logic).
        ref_bf16 = _reference_bf16(x, params)
        assert jnp.allclose(out, ref_bf16, atol=1e-3, rtol=0), "mismatch vs bf16 reference"
        # Looser check against the full-f32 PyTorch-semantics reference (bf16 MXU operands).
        ref_f32 = _reference_f32(x, params)
        assert jnp.allclose(out, ref_f32, atol=5e-2, rtol=0), "mismatch vs f32 reference"

    print("KERNEL_OK")
</pallas_src>

<mosaic_0001>
module attributes {stable_mosaic.version = 11 : i64} {
  func.func @_mlp_kernel(%arg0: i32, %arg1: memref<128x5xf32, #tpu.memory_space<vmem>>, %arg2: memref<64x5xbf16, #tpu.memory_space<vmem>>, %arg3: memref<64x1xf32, #tpu.memory_space<vmem>>, %arg4: memref<128x64xbf16, #tpu.memory_space<vmem>>, %arg5: memref<128x1xf32, #tpu.memory_space<vmem>>, %arg6: memref<256x128xbf16, #tpu.memory_space<vmem>>, %arg7: memref<256x1xf32, #tpu.memory_space<vmem>>, %arg8: memref<128x256xbf16, #tpu.memory_space<vmem>>, %arg9: memref<128x1xf32, #tpu.memory_space<vmem>>, %arg10: memref<64x128xbf16, #tpu.memory_space<vmem>>, %arg11: memref<64x1xf32, #tpu.memory_space<vmem>>, %arg12: memref<5x64xbf16, #tpu.memory_space<vmem>>, %arg13: memref<5x1xf32, #tpu.memory_space<vmem>>, %arg14: memref<5x128xf32, #tpu.memory_space<vmem>>) attributes {dimension_semantics = [#tpu.dimension_semantics<parallel>], iteration_bounds = array<i64: 1>, scalar_prefetch = 0 : i64, scratch_operands = 0 : i64, tpu.core_type = #tpu.core_type<tc>, window_params = [{transform_indices = @transform_0, window_bounds = array<i64: 128, 5>}, {pipeline_mode = #tpu.pipeline_mode<synchronous>, transform_indices = @transform_1, window_bounds = array<i64: 64, 5>}, {pipeline_mode = #tpu.pipeline_mode<synchronous>, transform_indices = @transform_2, window_bounds = array<i64: 64, 1>}, {pipeline_mode = #tpu.pipeline_mode<synchronous>, transform_indices = @transform_3, window_bounds = array<i64: 128, 64>}, {pipeline_mode = #tpu.pipeline_mode<synchronous>, transform_indices = @transform_4, window_bounds = array<i64: 128, 1>}, {pipeline_mode = #tpu.pipeline_mode<synchronous>, transform_indices = @transform_5, window_bounds = array<i64: 256, 128>}, {pipeline_mode = #tpu.pipeline_mode<synchronous>, transform_indices = @transform_6, window_bounds = array<i64: 256, 1>}, {pipeline_mode = #tpu.pipeline_mode<synchronous>, transform_indices = @transform_7, window_bounds = array<i64: 128, 256>}, {pipeline_mode = #tpu.pipeline_mode<synchronous>, transform_indices = @transform_8, window_bounds = array<i64: 128, 1>}, {pipeline_mode = #tpu.pipeline_mode<synchronous>, transform_indices = @transform_9, window_bounds = array<i64: 64, 128>}, {pipeline_mode = #tpu.pipeline_mode<synchronous>, transform_indices = @transform_10, window_bounds = array<i64: 64, 1>}, {pipeline_mode = #tpu.pipeline_mode<synchronous>, transform_indices = @transform_11, window_bounds = array<i64: 5, 64>}, {pipeline_mode = #tpu.pipeline_mode<synchronous>, transform_indices = @transform_12, window_bounds = array<i64: 5, 1>}, {transform_indices = @transform_13, window_bounds = array<i64: 5, 128>}]} {
    %c0 = arith.constant 0 : index
    %c0_0 = arith.constant 0 : index
    %0 = vector.load %arg1[%c0, %c0_0] : memref<128x5xf32, #tpu.memory_space<vmem>>, vector<128x5xf32>
    %1 = arith.truncf %0 : vector<128x5xf32> to vector<128x5xbf16>
    %c0_1 = arith.constant 0 : index
    %c0_2 = arith.constant 0 : index
    %2 = vector.load %arg2[%c0_1, %c0_2] : memref<64x5xbf16, #tpu.memory_space<vmem>>, vector<64x5xbf16>
    %cst = arith.constant dense<0.000000e+00> : vector<64x128xf32>
    %3 = tpu.matmul %2, %1, %cst {dimension_numbers = #tpu.dot_dimension_numbers<[1], [1], [0], [0], [0, 0, 1, 0], [], []>} : vector<64x5xbf16>, vector<128x5xbf16>, vector<64x128xf32> -> vector<64x128xf32>
    %c0_3 = arith.constant 0 : index
    %c0_4 = arith.constant 0 : index
    %4 = vector.load %arg3[%c0_3, %c0_4] : memref<64x1xf32, #tpu.memory_space<vmem>>, vector<64x1xf32>
    %5 = vector.broadcast %4 : vector<64x1xf32> to vector<64x128xf32>
    %6 = arith.addf %3, %5 : vector<64x128xf32>
    %cst_5 = arith.constant 0.000000e+00 : f32
    %7 = vector.broadcast %cst_5 : f32 to vector<64x128xf32>
    %8 = arith.maximumf %6, %7 : vector<64x128xf32>
    %c0_6 = arith.constant 0 : index
    %c0_7 = arith.constant 0 : index
    %9 = vector.load %arg4[%c0_6, %c0_7] : memref<128x64xbf16, #tpu.memory_space<vmem>>, vector<128x64xbf16>
    %10 = arith.truncf %8 : vector<64x128xf32> to vector<64x128xbf16>
    %cst_8 = arith.constant dense<0.000000e+00> : vector<128x128xf32>
    %11 = tpu.matmul %9, %10, %cst_8 {dimension_numbers = #tpu.dot_dimension_numbers<[1], [0], [0], [1], [0, 0, 1, 1], [], []>} : vector<128x64xbf16>, vector<64x128xbf16>, vector<128x128xf32> -> vector<128x128xf32>
    %c0_9 = arith.constant 0 : index
    %c0_10 = arith.constant 0 : index
    %12 = vector.load %arg5[%c0_9, %c0_10] : memref<128x1xf32, #tpu.memory_space<vmem>>, vector<128x1xf32>
    %13 = vector.broadcast %12 : vector<128x1xf32> to vector<128x128xf32>
    %14 = arith.addf %11, %13 : vector<128x128xf32>
    %cst_11 = arith.constant 0.000000e+00 : f32
    %15 = vector.broadcast %cst_11 : f32 to vector<128x128xf32>
    %16 = arith.maximumf %14, %15 : vector<128x128xf32>
    %c0_12 = arith.constant 0 : index
    %c0_13 = arith.constant 0 : index
    %17 = vector.load %arg6[%c0_12, %c0_13] : memref<256x128xbf16, #tpu.memory_space<vmem>>, vector<256x128xbf16>
    %18 = arith.truncf %16 : vector<128x128xf32> to vector<128x128xbf16>
    %cst_14 = arith.constant dense<0.000000e+00> : vector<256x128xf32>
    %19 = tpu.matmul %17, %18, %cst_14 {dimension_numbers = #tpu.dot_dimension_numbers<[1], [0], [0], [1], [0, 0, 1, 1], [], []>} : vector<256x128xbf16>, vector<128x128xbf16>, vector<256x128xf32> -> vector<256x128xf32>
    %c0_15 = arith.constant 0 : index
    %c0_16 = arith.constant 0 : index
    %20 = vector.load %arg7[%c0_15, %c0_16] : memref<256x1xf32, #tpu.memory_space<vmem>>, vector<256x1xf32>
    %21 = vector.broadcast %20 : vector<256x1xf32> to vector<256x128xf32>
    %22 = arith.addf %19, %21 : vector<256x128xf32>
    %cst_17 = arith.constant 0.000000e+00 : f32
    %23 = vector.broadcast %cst_17 : f32 to vector<256x128xf32>
    %24 = arith.maximumf %22, %23 : vector<256x128xf32>
    %c0_18 = arith.constant 0 : index
    %c0_19 = arith.constant 0 : index
    %25 = vector.load %arg8[%c0_18, %c0_19] : memref<128x256xbf16, #tpu.memory_space<vmem>>, vector<128x256xbf16>
    %26 = arith.truncf %24 : vector<256x128xf32> to vector<256x128xbf16>
    %cst_20 = arith.constant dense<0.000000e+00> : vector<128x128xf32>
    %27 = tpu.matmul %25, %26, %cst_20 {dimension_numbers = #tpu.dot_dimension_numbers<[1], [0], [0], [1], [0, 0, 1, 1], [], []>} : vector<128x256xbf16>, vector<256x128xbf16>, vector<128x128xf32> -> vector<128x128xf32>
    %c0_21 = arith.constant 0 : index
    %c0_22 = arith.constant 0 : index
    %28 = vector.load %arg9[%c0_21, %c0_22] : memref<128x1xf32, #tpu.memory_space<vmem>>, vector<128x1xf32>
    %29 = vector.broadcast %28 : vector<128x1xf32> to vector<128x128xf32>
    %30 = arith.addf %27, %29 : vector<128x128xf32>
    %cst_23 = arith.constant 0.000000e+00 : f32
    %31 = vector.broadcast %cst_23 : f32 to vector<128x128xf32>
    %32 = arith.maximumf %30, %31 : vector<128x128xf32>
    %c0_24 = arith.constant 0 : index
    %c0_25 = arith.constant 0 : index
    %33 = vector.load %arg10[%c0_24, %c0_25] : memref<64x128xbf16, #tpu.memory_space<vmem>>, vector<64x128xbf16>
    %34 = arith.truncf %32 : vector<128x128xf32> to vector<128x128xbf16>
    %cst_26 = arith.constant dense<0.000000e+00> : vector<64x128xf32>
    %35 = tpu.matmul %33, %34, %cst_26 {dimension_numbers = #tpu.dot_dimension_numbers<[1], [0], [0], [1], [0, 0, 1, 1], [], []>} : vector<64x128xbf16>, vector<128x128xbf16>, vector<64x128xf32> -> vector<64x128xf32>
    %c0_27 = arith.constant 0 : index
    %c0_28 = arith.constant 0 : index
    %36 = vector.load %arg11[%c0_27, %c0_28] : memref<64x1xf32, #tpu.memory_space<vmem>>, vector<64x1xf32>
    %37 = vector.broadcast %36 : vector<64x1xf32> to vector<64x128xf32>
    %38 = arith.addf %35, %37 : vector<64x128xf32>
    %cst_29 = arith.constant 0.000000e+00 : f32
    %39 = vector.broadcast %cst_29 : f32 to vector<64x128xf32>
    %40 = arith.maximumf %38, %39 : vector<64x128xf32>
    %c0_30 = arith.constant 0 : index
    %c0_31 = arith.constant 0 : index
    %41 = vector.load %arg12[%c0_30, %c0_31] : memref<5x64xbf16, #tpu.memory_space<vmem>>, vector<5x64xbf16>
    %42 = arith.truncf %40 : vector<64x128xf32> to vector<64x128xbf16>
    %cst_32 = arith.constant dense<0.000000e+00> : vector<5x128xf32>
    %43 = tpu.matmul %41, %42, %cst_32 {dimension_numbers = #tpu.dot_dimension_numbers<[1], [0], [0], [1], [0, 0, 1, 1], [], []>} : vector<5x64xbf16>, vector<64x128xbf16>, vector<5x128xf32> -> vector<5x128xf32>
    %c0_33 = arith.constant 0 : index
    %c0_34 = arith.constant 0 : index
    %44 = vector.load %arg13[%c0_33, %c0_34] : memref<5x1xf32, #tpu.memory_space<vmem>>, vector<5x1xf32>
    %45 = vector.broadcast %44 : vector<5x1xf32> to vector<5x128xf32>
    %46 = arith.addf %43, %45 : vector<5x128xf32>
    %47 = math.tanh %46 : vector<5x128xf32>
    %c0_35 = arith.constant 0 : index
    %c0_36 = arith.constant 0 : index
    %48 = vector.load %arg14[%c0_35, %c0_36] : memref<5x128xf32, #tpu.memory_space<vmem>>, vector<5x128xf32>
    tpu.vector_store %arg14[%c0_35, %c0_36], %47 {strides = array<i32>} : memref<5x128xf32, #tpu.memory_space<vmem>>, vector<5x128xf32>,
    return
  }
  func.func @transform_0(%arg0: i32) -> (i32, i32) {
    %c0_i32 = arith.constant 0 : i32
    %c0_i32_0 = arith.constant 0 : i32
    return %arg0, %c0_i32 : i32, i32
  }
  func.func @transform_1(%arg0: i32) -> (i32, i32) {
    %c0_i32 = arith.constant 0 : i32
    %c0_i32_0 = arith.constant 0 : i32
    %c0_i32_1 = arith.constant 0 : i32
    return %c0_i32, %c0_i32_0 : i32, i32
  }
  func.func @transform_2(%arg0: i32) -> (i32, i32) {
    %c0_i32 = arith.constant 0 : i32
    %c0_i32_0 = arith.constant 0 : i32
    %c0_i32_1 = arith.constant 0 : i32
    return %c0_i32, %c0_i32_0 : i32, i32
  }
  func.func @transform_3(%arg0: i32) -> (i32, i32) {
    %c0_i32 = arith.constant 0 : i32
    %c0_i32_0 = arith.constant 0 : i32
    %c0_i32_1 = arith.constant 0 : i32
    return %c0_i32, %c0_i32_0 : i32, i32
  }
  func.func @transform_4(%arg0: i32) -> (i32, i32) {
    %c0_i32 = arith.constant 0 : i32
    %c0_i32_0 = arith.constant 0 : i32
    %c0_i32_1 = arith.constant 0 : i32
    return %c0_i32, %c0_i32_0 : i32, i32
  }
  func.func @transform_5(%arg0: i32) -> (i32, i32) {
    %c0_i32 = arith.constant 0 : i32
    %c0_i32_0 = arith.constant 0 : i32
    %c0_i32_1 = arith.constant 0 : i32
    return %c0_i32, %c0_i32_0 : i32, i32
  }
  func.func @transform_6(%arg0: i32) -> (i32, i32) {
    %c0_i32 = arith.constant 0 : i32
    %c0_i32_0 = arith.constant 0 : i32
    %c0_i32_1 = arith.constant 0 : i32
    return %c0_i32, %c0_i32_0 : i32, i32
  }
  func.func @transform_7(%arg0: i32) -> (i32, i32) {
    %c0_i32 = arith.constant 0 : i32
    %c0_i32_0 = arith.constant 0 : i32
    %c0_i32_1 = arith.constant 0 : i32
    return %c0_i32, %c0_i32_0 : i32, i32
  }
  func.func @transform_8(%arg0: i32) -> (i32, i32) {
    %c0_i32 = arith.constant 0 : i32
    %c0_i32_0 = arith.constant 0 : i32
    %c0_i32_1 = arith.constant 0 : i32
    return %c0_i32, %c0_i32_0 : i32, i32
  }
  func.func @transform_9(%arg0: i32) -> (i32, i32) {
    %c0_i32 = arith.constant 0 : i32
    %c0_i32_0 = arith.constant 0 : i32
    %c0_i32_1 = arith.constant 0 : i32
    return %c0_i32, %c0_i32_0 : i32, i32
  }
  func.func @transform_10(%arg0: i32) -> (i32, i32) {
    %c0_i32 = arith.constant 0 : i32
    %c0_i32_0 = arith.constant 0 : i32
    %c0_i32_1 = arith.constant 0 : i32
    return %c0_i32, %c0_i32_0 : i32, i32
  }
  func.func @transform_11(%arg0: i32) -> (i32, i32) {
    %c0_i32 = arith.constant 0 : i32
    %c0_i32_0 = arith.constant 0 : i32
    %c0_i32_1 = arith.constant 0 : i32
    return %c0_i32, %c0_i32_0 : i32, i32
  }
  func.func @transform_12(%arg0: i32) -> (i32, i32) {
    %c0_i32 = arith.constant 0 : i32
    %c0_i32_0 = arith.constant 0 : i32
    %c0_i32_1 = arith.constant 0 : i32
    return %c0_i32, %c0_i32_0 : i32, i32
  }
  func.func @transform_13(%arg0: i32) -> (i32, i32) {
    %c0_i32 = arith.constant 0 : i32
    %c0_i32_0 = arith.constant 0 : i32
    return %c0_i32, %arg0 : i32, i32
  }
}

</mosaic_0001>

<bundles_post_ra>
// kernel: advanced_voice_converter.1
= control target key start
LH: loop header
LB: loop body
LE: loop exit
PB: predicated region body
PF: predicated region fallthrough
CT: control target
= control target key end

     0   :  { %v2005_v0 = vmov 0   ;;  %vm145_vm0 = vcmask 39936   ;;  %vm411_vm1 = vcmask 523264   ;;  %vm2007_vm2 = vmmov 0   ;;  %s2620_s2 = inlined_call_operand.vmem [shape: f32[64,1], index: 2, kind: input, shape index: {}]   ;;  %s2621_s0 = inlined_call_operand.vmem [shape: f32[128,5], index: 0, kind: input, shape index: {}]   ;;  %s2622_s4 = inlined_call_operand.vmem [shape: f32[128,1], index: 4, kind: input, shape index: {}]   ;;  %s2623_s1 = inlined_call_operand.vmem [shape: bf16[64,5], index: 1, kind: input, shape index: {}]   ;;  %s2624_s6 = inlined_call_operand.vmem [shape: f32[256,1], index: 6, kind: input, shape index: {}]   ;;  %s2625_s8 = inlined_call_operand.vmem [shape: f32[128,1], index: 8, kind: input, shape index: {}]   ;;  %s2626_s10 = inlined_call_operand.vmem [shape: f32[64,1], index: 10, kind: input, shape index: {}]   ;;  %s2627_s12 = inlined_call_operand.vmem [shape: f32[5,1], index: 12, kind: input, shape index: {}]   ;;  %s2628_s3 = inlined_call_operand.vmem [shape: bf16[128,64], index: 3, kind: input, shape index: {}]   ;;  %s2629_s5 = inlined_call_operand.vmem [shape: bf16[256,128], index: 5, kind: input, shape index: {}]   ;;  %s2630_s7 = inlined_call_operand.vmem [shape: bf16[128,256], index: 7, kind: input, shape index: {}]   ;;  %s2631_s9 = inlined_call_operand.vmem [shape: bf16[64,128], index: 9, kind: input, shape index: {}]   ;;  %s2632_s11 = inlined_call_operand.vmem [shape: bf16[5,64], index: 11, kind: input, shape index: {}]   ;;  %s2633_s13 = inlined_call_operand.vmem [shape: f32[5,128], index: 13, kind: output, shape index: {}]  }
   0x1   :  { %1946 = vset.pattern.permute.xlu1 %v2005_v0  ;;  %1945 = vset.pattern.permute.xlu0 %v2005_v0  ;;  %v79_v1 = vld [vmem:[%s2620_s2 + $0x10] sm:$0xff]  ;;  %v77_v2 = vld [vmem:[%s2620_s2] sm:$0xff]  ;;  %v46_v4 = vld [vmem:[%s2621_s0 + $0x8] sm:$0xff] }
   0x2   :  { %v45_v3 = vld [vmem:[%s2621_s0] sm:$0xff]  ;;  %97 = vperm.xlu1 %1946, %v79_v1   ;;  %87 = vperm.xlu0 %1945, %v77_v2   ;;  %v80_v6 = vld [vmem:[%s2620_s2 + $0x18] sm:$0xff]  ;;  %v47_v7 = vld [vmem:[%s2621_s0 + $0x10] sm:$0xff] }
   0x3   :  { %v61_v5 = vpack.c.bf16 %v46_v4, %v45_v3  ;;  %v78_v8 = vld [vmem:[%s2620_s2 + $0x8] sm:$0xff]  ;;  %v48_v9 = vld [vmem:[%s2621_s0 + $0x18] sm:$0xff]  ;;  %v81_v13 = vld [vmem:[%s2620_s2 + $0x20] sm:$0xff] }
   0x4   :  { %v62_v11 = vpack.c.bf16 %v48_v9, %v47_v7  ;;  %v82_v12 = vld [vmem:[%s2620_s2 + $0x28] sm:$0xff]  ;;  %v49_v14 = vld [vmem:[%s2621_s0 + $0x20] sm:$0xff]  ;;  %v84_v17 = vld [vmem:[%s2620_s2 + $0x38] sm:$0xff] }
   0x5   :  { %1934 = vmatprep.subr.msk.bf16.mxu0 %vm145_vm0, %v61_v5  ;;  %v159_v10 = vsel %vm145_vm0, %v61_v5, 0  ;;  %v50_v15 = vld [vmem:[%s2621_s0 + $0x28] sm:$0xff]  ;;  %v83_v19 = vld [vmem:[%s2620_s2 + $0x30] sm:$0xff]  ;;  %v275_v21 = vld [vmem:[%s2622_s4] sm:$0xff] }
   0x6   :  { %1803 = vmatpush3.bf16.xpose.msra.mxu0 %v159_v10  ;;  %102 = vperm.xlu1 %1946, %v80_v6   ;;  %v162_v16 = vsel %vm145_vm0, %v62_v11, 0  ;;  %v63_v18 = vpack.c.bf16 %v50_v15, %v49_v14  ;;  %v276_v20 = vld [vmem:[%s2622_s4 + $0x8] sm:$0xff]  ;;  %v51_v22 = vld [vmem:[%s2621_s0 + $0x30] sm:$0xff]  ;;  %v52_v23 = vld [vmem:[%s2621_s0 + $0x38] sm:$0xff] }
   0x7   :  { %92 = vperm.xlu0 %1945, %v78_v8   ;;  %1935 = vmatprep.subr.msk.bf16.mxu0 %vm145_vm0, %v62_v11  ;;  %v1947_v24 = vld [vmem:[%s2623_s1] sm:$0xff]   ;;  %v278_v26 = vld [vmem:[%s2622_s4 + $0x18] sm:$0xff]  ;;  %v64_v27 = vpack.c.bf16 %v52_v23, %v51_v22  ;;  %v277_v28 = vld [vmem:[%s2622_s4 + $0x10] sm:$0xff] }
   0x8   :  { %v165_v25 = vsel %vm145_vm0, %v63_v18, 0  ;;  %1818 = vmatprep.mubr.msk.bf16.mxu0 %vm145_vm0, %v1947_v24  ;;  %v280_v29 = vld [vmem:[%s2622_s4 + $0x28] sm:$0xff]  ;;  %v279_v30 = vld [vmem:[%s2622_s4 + $0x20] sm:$0xff]  ;;  %v282_v34 = vld [vmem:[%s2622_s4 + $0x38] sm:$0xff] }
   0x9   :  { %v53_v31 = vld [vmem:[%s2621_s0 + $0x40] sm:$0xff]  ;;  %v54_v32 = vld [vmem:[%s2621_s0 + $0x48] sm:$0xff]  ;;  %v168_v33 = vsel %vm145_vm0, %v64_v27, 0  ;;  %v281_v36 = vld [vmem:[%s2622_s4 + $0x30] sm:$0xff] }
   0xa   :  { %112 = vperm.xlu1 %1946, %v82_v12   ;;  %v65_v35 = vpack.c.bf16 %v54_v32, %v53_v31  ;;  %v284_v37 = vld [vmem:[%s2622_s4 + $0x48] sm:$0xff]  ;;  %v283_v38 = vld [vmem:[%s2622_s4 + $0x40] sm:$0xff]  ;;  %v55_v39 = vld [vmem:[%s2621_s0 + $0x50] sm:$0xff] }
   0xb   :  { %107 = vperm.xlu0 %1945, %v81_v13   ;;  %v56_v40 = vld [vmem:[%s2621_s0 + $0x58] sm:$0xff]  ;;  %v285_v44 = vld [vmem:[%s2622_s4 + $0x50] sm:$0xff]  ;;  %v288_v45 = vld [vmem:[%s2622_s4 + $0x68] sm:$0xff] }
   0xc   :  { %v171_v41 = vsel %vm145_vm0, %v65_v35, 0  ;;  %v286_v42 = vld [vmem:[%s2622_s4 + $0x58] sm:$0xff]  ;;  %v66_v43 = vpack.c.bf16 %v56_v40, %v55_v39  ;;  %v287_v46 = vld [vmem:[%s2622_s4 + $0x60] sm:$0xff]  ;;  %v58_v48 = vld [vmem:[%s2621_s0 + $0x68] sm:$0xff] }
   0xd   :  { %v57_v47 = vld [vmem:[%s2621_s0 + $0x60] sm:$0xff]  ;;  %v290_v50 = vld [vmem:[%s2622_s4 + $0x78] sm:$0xff]  ;;  %v289_v52 = vld [vmem:[%s2622_s4 + $0x70] sm:$0xff] }
   0xe   :  { %1805 = vmatpush3.bf16.xpose.msra.mxu0 %v162_v16  ;;  %122 = vperm.xlu1 %1946, %v84_v17   ;;  %v174_v49 = vsel %vm145_vm0, %v66_v43, 0  ;;  %v67_v51 = vpack.c.bf16 %v58_v48, %v57_v47  ;;  %v606_v53 = vld [vmem:[%s2624_s6 + $0x88] sm:$0xff]  ;;  %v605_v54 = vld [vmem:[%s2624_s6 + $0x80] sm:$0xff]  ;;  %v59_v55 = vld [vmem:[%s2621_s0 + $0x70] sm:$0xff] }
   0xf   :  { %117 = vperm.xlu0 %1945, %v83_v19   ;;  %1936 = vmatprep.subr.msk.bf16.mxu0 %vm145_vm0, %v63_v18  ;;  %v60_v56 = vld [vmem:[%s2621_s0 + $0x78] sm:$0xff]  ;;  %v590_v58 = vld [vmem:[%s2624_s6 + $0x8] sm:$0xff]  ;;  %v589_v60 = vld [vmem:[%s2624_s6] sm:$0xff] }
  0x10   :  { %v177_v57 = vsel %vm145_vm0, %v67_v51, 0  ;;  %v68_v59 = vpack.c.bf16 %v60_v56, %v59_v55  ;;  %v608_v61 = vld [vmem:[%s2624_s6 + $0x98] sm:$0xff]  ;;  %v607_v62 = vld [vmem:[%s2624_s6 + $0x90] sm:$0xff]  ;;  %v610_v2 = vld [vmem:[%s2624_s6 + $0xa8] sm:$0xff] }
  0x11   :  { %v592_v0 = vld [vmem:[%s2624_s6 + $0x18] sm:$0xff]  ;;  %v591_v1 = vld [vmem:[%s2624_s6 + $0x10] sm:$0xff]  ;;  %v609_v3 = vld [vmem:[%s2624_s6 + $0xa0] sm:$0xff] }
  0x12   :  { %298 = vperm.xlu1 %1946, %v276_v20   ;;  %v180_v63 = vsel %vm145_vm0, %v68_v59, 0  ;;  %v1948_v4 = vld [vmem:[%s2623_s1 + $0x8] sm:$0xff]   ;;  %v1949_v5 = vld [vmem:[%s2623_s1 + $0x10] sm:$0xff]   ;;  %v593_v7 = vld [vmem:[%s2624_s6 + $0x20] sm:$0xff] }
  0x13   :  { %293 = vperm.xlu0 %1945, %v275_v21   ;;  %v594_v6 = vld [vmem:[%s2624_s6 + $0x28] sm:$0xff]  ;;  %v612_v8 = vld [vmem:[%s2624_s6 + $0xb8] sm:$0xff]  ;;  %v611_v9 = vld [vmem:[%s2624_s6 + $0xb0] sm:$0xff] }
  0x14   :  { %v1950_v10 = vld [vmem:[%s2623_s1 + $0x18] sm:$0xff]   ;;  %v595_v12 = vld [vmem:[%s2624_s6 + $0x30] sm:$0xff]  ;;  %v614_v13 = vld [vmem:[%s2624_s6 + $0xc8] sm:$0xff] }
  0x15   :  { %v596_v11 = vld [vmem:[%s2624_s6 + $0x38] sm:$0xff]  ;;  %v613_v14 = vld [vmem:[%s2624_s6 + $0xc0] sm:$0xff]  ;;  %v598_v15 = vld [vmem:[%s2624_s6 + $0x48] sm:$0xff] }
  0x16   :  { %1807 = vmatpush3.bf16.xpose.msra.mxu0 %v165_v25  ;;  %308 = vperm.xlu1 %1946, %v278_v26   ;;  %v597_v16 = vld [vmem:[%s2624_s6 + $0x40] sm:$0xff]  ;;  %v616_v17 = vld [vmem:[%s2624_s6 + $0xd8] sm:$0xff]  ;;  %v615_v18 = vld [vmem:[%s2624_s6 + $0xd0] sm:$0xff] }
  0x17   :  { %303 = vperm.xlu0 %1945, %v277_v28   ;;  %1937 = vmatprep.subr.msk.bf16.mxu0 %vm145_vm0, %v64_v27  ;;  %v600_v19 = vld [vmem:[%s2624_s6 + $0x58] sm:$0xff]  ;;  %v599_v20 = vld [vmem:[%s2624_s6 + $0x50] sm:$0xff]  ;;  %v618_v21 = vld [vmem:[%s2624_s6 + $0xe8] sm:$0xff] }
  0x18   :  { %v617_v22 = vld [vmem:[%s2624_s6 + $0xe0] sm:$0xff]  ;;  %v602_v23 = vld [vmem:[%s2624_s6 + $0x68] sm:$0xff]  ;;  %v620_v25 = vld [vmem:[%s2624_s6 + $0xf8] sm:$0xff] }
  0x19   :  { %v601_v24 = vld [vmem:[%s2624_s6 + $0x60] sm:$0xff]  ;;  %v619_v26 = vld [vmem:[%s2624_s6 + $0xf0] sm:$0xff]  ;;  %v604_v27 = vld [vmem:[%s2624_s6 + $0x78] sm:$0xff] }
  0x1a   :  { %318 = vperm.xlu1 %1946, %v280_v29   ;;  %v603_v28 = vld [vmem:[%s2624_s6 + $0x70] sm:$0xff]  ;;  %v1103_v29 = vld [vmem:[%s2625_s8 + $0x8] sm:$0xff]  ;;  %v1105_v31 = vld [vmem:[%s2625_s8 + $0x18] sm:$0xff] }
  0x1b   :  { %313 = vperm.xlu0 %1945, %v279_v30   ;;  %v1102_v30 = vld [vmem:[%s2625_s8] sm:$0xff]  ;;  %v1104_v32 = vld [vmem:[%s2625_s8 + $0x10] sm:$0xff]  ;;  %v1113_v39 = vld [vmem:[%s2625_s8 + $0x58] sm:$0xff] }
  0x1c   :  { %v1112_v40 = vld [vmem:[%s2625_s8 + $0x50] sm:$0xff]  ;;  %v1410_v47 = vld [vmem:[%s2626_s10 + $0x18] sm:$0xff] }
  0x1d   :  { %v1409_v48 = vld [vmem:[%s2626_s10 + $0x10] sm:$0xff] }
  0x1e   :  { %1809 = vmatpush3.bf16.xpose.msra.mxu0 %v168_v33  ;;  %328 = vperm.xlu1 %1946, %v282_v34   ;;  %v1107_v33 = vld [vmem:[%s2625_s8 + $0x28] sm:$0xff]  ;;  %v1106_v34 = vld [vmem:[%s2625_s8 + $0x20] sm:$0xff] }
  0x1f   :  { %323 = vperm.xlu0 %1945, %v281_v36   ;;  %1938 = vmatprep.subr.msk.bf16.mxu0 %vm145_vm0, %v65_v35  ;;  %v1109_v35 = vld [vmem:[%s2625_s8 + $0x38] sm:$0xff]  ;;  %v1108_v36 = vld [vmem:[%s2625_s8 + $0x30] sm:$0xff] }
  0x22   :  { %338 = vperm.xlu1 %1946, %v284_v37   ;;  %v1111_v37 = vld [vmem:[%s2625_s8 + $0x48] sm:$0xff] }
  0x23   :  { %333 = vperm.xlu0 %1945, %v283_v38   ;;  %v1110_v38 = vld [vmem:[%s2625_s8 + $0x40] sm:$0xff] }
  0x26   :  { %1811 = vmatpush3.bf16.xpose.msra.mxu0 %v171_v41  ;;  %348 = vperm.xlu1 %1946, %v286_v42   ;;  %v1115_v41 = vld [vmem:[%s2625_s8 + $0x68] sm:$0xff]  ;;  %v1114_v42 = vld [vmem:[%s2625_s8 + $0x60] sm:$0xff] }
  0x27   :  { %343 = vperm.xlu0 %1945, %v285_v44   ;;  %1939 = vmatprep.subr.msk.bf16.mxu0 %vm145_vm0, %v66_v43  ;;  %v1117_v43 = vld [vmem:[%s2625_s8 + $0x78] sm:$0xff]  ;;  %v1116_v44 = vld [vmem:[%s2625_s8 + $0x70] sm:$0xff] }
  0x2a   :  { %358 = vperm.xlu1 %1946, %v288_v45   ;;  %v1408_v45 = vld [vmem:[%s2626_s10 + $0x8] sm:$0xff] }
  0x2b   :  { %353 = vperm.xlu0 %1945, %v287_v46   ;;  %v1407_v46 = vld [vmem:[%s2626_s10] sm:$0xff] }
  0x2e   :  { %1813 = vmatpush3.bf16.xpose.msra.mxu0 %v174_v49  ;;  %368 = vperm.xlu1 %1946, %v290_v50   ;;  %v1412_v49 = vld [vmem:[%s2626_s10 + $0x28] sm:$0xff]  ;;  %v1411_v50 = vld [vmem:[%s2626_s10 + $0x20] sm:$0xff] }
  0x2f   :  { %363 = vperm.xlu0 %1945, %v289_v52   ;;  %1940 = vmatprep.subr.msk.bf16.mxu0 %vm145_vm0, %v67_v51  ;;  %v1414_v51 = vld [vmem:[%s2626_s10 + $0x38] sm:$0xff]  ;;  %v1413_v52 = vld [vmem:[%s2626_s10 + $0x30] sm:$0xff] }
  0x32   :  { %708 = vperm.xlu1 %1946, %v606_v53   ;;  %v1557_v53 = vld [vmem:[%s2627_s12] sm:$0x1f] }
  0x33   :  { %703 = vperm.xlu0 %1945, %v605_v54   ;;  %v1951_v54 = vld [vmem:[%s2628_s3] sm:$0xff]  }
  0x34   :  { %1834 = vmatprep.mubr.msk.bf16.mxu1 %vm411_vm1, %v1951_v54 }
  0x36   :  { %1815 = vmatpush3.bf16.xpose.msra.mxu0 %v177_v57  ;;  %628 = vperm.xlu1 %1946, %v590_v58  }
  0x37   :  { %623 = vperm.xlu0 %1945, %v589_v60   ;;  %1941 = vmatprep.subr.msk.bf16.mxu0 %vm145_vm0, %v68_v59 }
  0x3a   :  { %718 = vperm.xlu1 %1946, %v608_v61  }
  0x3b   :  { %713 = vperm.xlu0 %1945, %v607_v62  }
  0x3e   :  { %1817 = vmatpush3.bf16.xpose.msra.mxu0 %v180_v63  ;;  %638 = vperm.xlu1 %1946, %v592_v0  }
  0x3f   :  { %633 = vperm.xlu0 %1945, %v591_v1  }
  0x42   :  { %728 = vperm.xlu1 %1946, %v610_v2  }
  0x43   :  { %723 = vperm.xlu0 %1945, %v609_v3  }
  0x45   :  { %1819 = vmatmul.mubr.msk.bf16.vlgmr.msra.gmra.mrb[0].mxu0 %vm145_vm0, %v1948_v4 }
  0x46   :  { %648 = vperm.xlu1 %1946, %v594_v6   ;;  %1822 = vmatprep.mubr.msk.bf16.mxu0 %vm145_vm0, %v1949_v5 }
  0x47   :  { %643 = vperm.xlu0 %1945, %v593_v7  }
  0x4a   :  { %738 = vperm.xlu1 %1946, %v612_v8  }
  0x4b   :  { %733 = vperm.xlu0 %1945, %v611_v9  }
  0x4d   :  { %1823 = vmatmul.mubr.msk.bf16.gmra.mrb[4].mxu0 %vm145_vm0, %v1950_v10 }
  0x4e   :  { %658 = vperm.xlu1 %1946, %v596_v11  }
  0x4f   :  { %653 = vperm.xlu0 %1945, %v595_v12  }
  0x52   :  { %748 = vperm.xlu1 %1946, %v614_v13  }
  0x53   :  { %743 = vperm.xlu0 %1945, %v613_v14  }
  0x56   :  { %668 = vperm.xlu1 %1946, %v598_v15  }
  0x57   :  { %663 = vperm.xlu0 %1945, %v597_v16  }
  0x5a   :  { %758 = vperm.xlu1 %1946, %v616_v17  }
  0x5b   :  { %753 = vperm.xlu0 %1945, %v615_v18  }
  0x5e   :  { %678 = vperm.xlu1 %1946, %v600_v19  }
  0x5f   :  { %673 = vperm.xlu0 %1945, %v599_v20  }
  0x62   :  { %768 = vperm.xlu1 %1946, %v618_v21  }
  0x63   :  { %763 = vperm.xlu0 %1945, %v617_v22  }
  0x66   :  { %688 = vperm.xlu1 %1946, %v602_v23  }
  0x67   :  { %683 = vperm.xlu0 %1945, %v601_v24  }
  0x6a   :  { %778 = vperm.xlu1 %1946, %v620_v25  }
  0x6b   :  { %773 = vperm.xlu0 %1945, %v619_v26  }
  0x6e   :  { %698 = vperm.xlu1 %1946, %v604_v27   ;;  %v1952_v27 = vld [vmem:[%s2628_s3 + $0x8] sm:$0xff]  }
  0x6f   :  { %693 = vperm.xlu0 %1945, %v603_v28   ;;  %v1953_v28 = vld [vmem:[%s2628_s3 + $0x10] sm:$0xff]  }
  0x72   :  { %1125 = vperm.xlu1 %1946, %v1103_v29   ;;  %v1954_v29 = vld [vmem:[%s2628_s3 + $0x18] sm:$0xff]  }
  0x73   :  { %1120 = vperm.xlu0 %1945, %v1102_v30   ;;  %v1955_v30 = vld [vmem:[%s2628_s3 + $0x20] sm:$0xff]  }
  0x76   :  { %1135 = vperm.xlu1 %1946, %v1105_v31   ;;  %v1956_v31 = vld [vmem:[%s2628_s3 + $0x28] sm:$0xff]  }
  0x77   :  { %1130 = vperm.xlu0 %1945, %v1104_v32   ;;  %v1957_v32 = vld [vmem:[%s2628_s3 + $0x30] sm:$0xff]  }
  0x7a   :  { %1145 = vperm.xlu1 %1946, %v1107_v33   ;;  %v1958_v33 = vld [vmem:[%s2628_s3 + $0x38] sm:$0xff]  }
  0x7b   :  { %1140 = vperm.xlu0 %1945, %v1106_v34   ;;  %v1959_v34 = vld [vmem:[%s2629_s5] sm:$0xff]  }
  0x7e   :  { %1155 = vperm.xlu1 %1946, %v1109_v35  }
  0x7f   :  { %1150 = vperm.xlu0 %1945, %v1108_v36  }
  0x81   :  { %v88_v55 = vpop.permute.xlu0 %87  ;;  %v98_v56 = vpop.permute.xlu1 %97 }
  0x82   :  { %1165 = vperm.xlu1 %1946, %v1111_v37  }
  0x83   :  { %1160 = vperm.xlu0 %1945, %v1110_v38  }
  0x85   :  { %v103_v58 = vpop.permute.xlu1 %102 }
  0x86   :  { %1175 = vperm.xlu1 %1946, %v1113_v39   ;;  %v93_v57 = vpop.permute.xlu0 %92 }
  0x87   :  { %1170 = vperm.xlu0 %1945, %v1112_v40  }
  0x89   :  { %v113_v3 = vpop.permute.xlu1 %112 }
  0x8a   :  { %1185 = vperm.xlu1 %1946, %v1115_v41   ;;  %v108_v62 = vpop.permute.xlu0 %107 }
  0x8b   :  { %1180 = vperm.xlu0 %1945, %v1114_v42  }
  0x8d   :  { %v123_v15 = vpop.permute.xlu1 %122 }
  0x8e   :  { %1195 = vperm.xlu1 %1946, %v1117_v43   ;;  %v118_v10 = vpop.permute.xlu0 %117 }
  0x8f   :  { %1190 = vperm.xlu0 %1945, %v1116_v44  }
  0x91   :  { %v299_v36 = vpop.permute.xlu1 %298 }
  0x92   :  { %1422 = vperm.xlu1 %1946, %v1408_v45   ;;  %v294_v35 = vpop.permute.xlu0 %293 }
  0x93   :  { %1417 = vperm.xlu0 %1945, %v1407_v46  }
  0x95   :  { %v309_v38 = vpop.permute.xlu1 %308 }
  0x96   :  { %1432 = vperm.xlu1 %1946, %v1410_v47   ;;  %v304_v37 = vpop.permute.xlu0 %303 }
  0x97   :  { %1427 = vperm.xlu0 %1945, %v1409_v48  }
  0x99   :  { %v319_v40 = vpop.permute.xlu1 %318 }
  0x9a   :  { %1442 = vperm.xlu1 %1946, %v1412_v49   ;;  %v314_v39 = vpop.permute.xlu0 %313 }
  0x9b   :  { %1437 = vperm.xlu0 %1945, %v1411_v50  }
  0x9d   :  { %v329_v45 = vpop.permute.xlu1 %328 }
  0x9e   :  { %1452 = vperm.xlu1 %1946, %v1414_v51   ;;  %v324_v41 = vpop.permute.xlu0 %323 }
  0x9f   :  { %1447 = vperm.xlu0 %1945, %v1413_v52  }
  0xa3   :  { %1560 = vperm.xlu0 %1945, %v1557_v53   ;;  %v334_v53 = vpop.permute.xlu0 %333 }
 0x118   :  { %v1820_v59 = vpop.f32.mrb[0].mxu0 }
 0x119   :  { %v225_v60 = vadd.f32 %v1820_v59, %v98_v56  ;;  %v216_v61 = vpop.f32.mrb[1].mxu0 }
 0x11a   :  { %v217_v63 = vadd.f32 %v216_v61, %v88_v55  ;;  %v1821_v0 = vpop.f32.mrb[2].mxu0 }
 0x11b   :  { %v228_v1 = vadd.f32 %v1821_v0, %v103_v58  ;;  %v219_v2 = vpop.f32.mrb[3].mxu0  ;;  %v249_v5 = vmax.f32 %v225_v60, 0.0 }
 0x11c   :  { %v220_v4 = vadd.f32 %v219_v2, %v93_v57  ;;  %v247_v7 = vmax.f32 %v217_v63, 0.0  ;;  %v339_v57 = vpop.permute.xlu1 %338  ;;  %v344_v2 = vpop.permute.xlu0 %343 }
 0x11d   :  { %v250_v6 = vmax.f32 %v228_v1, 0.0 }
 0x11e   :  { %v248_v8 = vmax.f32 %v220_v4, 0.0 }
 0x11f   :  { %v272_v9 = vpack.c.bf16 %v250_v6, %v249_v5 }
 0x120   :  { %v1824_v11 = vpop.f32.mrb[4].mxu0  ;;  %v271_v12 = vpack.c.bf16 %v248_v8, %v247_v7  ;;  %v349_v6 = vpop.permute.xlu1 %348 }
 0x121   :  { %v241_v13 = vadd.f32 %v1824_v11, %v118_v10  ;;  %v232_v14 = vpop.f32.mrb[5].mxu0 }
 0x122   :  { %v233_v16 = vadd.f32 %v232_v14, %v108_v62  ;;  %v1825_v17 = vpop.f32.mrb[6].mxu0  ;;  %1826 = vmatprep.subr.bf16.mxu1 %v271_v12  ;;  %v354_v14 = vpop.permute.xlu0 %353 }
 0x123   :  { %v244_v18 = vadd.f32 %v1825_v17, %v123_v15  ;;  %v235_v19 = vpop.f32.mrb[7].mxu0  ;;  %1827 = vmatpush3.bf16.msra.mxu1 %v271_v12  ;;  %v253_v21 = vmax.f32 %v241_v13, 0.0 }
 0x124   :  { %v236_v20 = vadd.f32 %v235_v19, %v113_v3  ;;  %1828 = vmatprep.subr.bf16.mxu1 %v272_v9  ;;  %v251_v23 = vmax.f32 %v233_v16, 0.0  ;;  %v359_v19 = vpop.permute.xlu1 %358 }
 0x125   :  { %v254_v22 = vmax.f32 %v244_v18, 0.0 }
 0x126   :  { %v252_v24 = vmax.f32 %v236_v20, 0.0 }
 0x127   :  { %v274_v25 = vpack.c.bf16 %v254_v22, %v253_v21  ;;  %1829 = vmatpush3.bf16.msra.mxu1 %v272_v9 }
 0x128   :  { %v273_v26 = vpack.c.bf16 %v252_v24, %v251_v23 }
 0x12a   :  { %1830 = vmatprep.subr.bf16.mxu1 %v273_v26 }
 0x12b   :  { %1831 = vmatpush3.bf16.msra.mxu1 %v273_v26  ;;  %v364_v26 = vpop.permute.xlu0 %363 }
 0x12c   :  { %1832 = vmatprep.subr.bf16.mxu1 %v274_v25 }
 0x12f   :  { %1833 = vmatpush3.bf16.msra.mxu1 %v274_v25 }
 0x132   :  { %1835 = vmatmul.mubr.msk.bf16.vlgmr.msra.gmra.mrb[0].mxu1 %vm411_vm1, %v1952_v27 }
 0x133   :  { %1838 = vmatprep.mubr.msk.bf16.mxu1 %vm411_vm1, %v1953_v28 }
 0x13a   :  { %1839 = vmatmul.mubr.msk.bf16.gmra.mrb[4].mxu1 %vm411_vm1, %v1954_v29 }
 0x13b   :  { %1842 = vmatprep.mubr.msk.bf16.mxu1 %vm411_vm1, %v1955_v30 }
 0x142   :  { %1843 = vmatmul.mubr.msk.bf16.gmra.mrb[8].mxu1 %vm411_vm1, %v1956_v31  ;;  %v369_v31 = vpop.permute.xlu1 %368 }
 0x143   :  { %1846 = vmatprep.mubr.msk.bf16.mxu1 %vm411_vm1, %v1957_v32 }
 0x14a   :  { %1847 = vmatmul.mubr.msk.bf16.gmra.mrb[12].mxu1 %vm411_vm1, %v1958_v33 }
 0x14b   :  { %1866 = vmatprep.mubr.bf16.mxu1 %v1959_v34 }
 0x205   :  { %v1836_v42 = vpop.f32.mrb[0].mxu1 }
 0x206   :  { %v479_v43 = vadd.f32 %v1836_v42, %v304_v37  ;;  %v470_v44 = vpop.f32.mrb[1].mxu1 }
 0x207   :  { %v471_v46 = vadd.f32 %v470_v44, %v294_v35  ;;  %v1837_v47 = vpop.f32.mrb[2].mxu1  ;;  %v1961_v44 = vld [vmem:[%s2629_s5 + $0x10] sm:$0xff]  }
 0x208   :  { %v482_v48 = vadd.f32 %v1837_v47, %v309_v38  ;;  %v473_v49 = vpop.f32.mrb[3].mxu1  ;;  %v535_v51 = vmax.f32 %v479_v43, 0.0  ;;  %v1960_v43 = vld [vmem:[%s2629_s5 + $0x8] sm:$0xff]  }
 0x209   :  { %v474_v50 = vadd.f32 %v473_v49, %v299_v36  ;;  %v533_v54 = vmax.f32 %v471_v46, 0.0  ;;  %v1963_v46 = vld [vmem:[%s2629_s5 + $0x20] sm:$0xff]   ;;  %v1964_v47 = vld [vmem:[%s2629_s5 + $0x28] sm:$0xff]   ;;  %v1966_v49 = vld [vmem:[%s2629_s5 + $0x38] sm:$0xff]  }
 0x20a   :  { %v536_v52 = vmax.f32 %v482_v48, 0.0  ;;  %v1965_v48 = vld [vmem:[%s2629_s5 + $0x30] sm:$0xff]  }
 0x20b   :  { %v534_v55 = vmax.f32 %v474_v50, 0.0  ;;  %v1967_v50 = vld [vmem:[%s2629_s5 + $0x40] sm:$0xff]  }
 0x20c   :  { %v582_v56 = vpack.c.bf16 %v536_v52, %v535_v51  ;;  %v1968_v51 = vld [vmem:[%s2629_s5 + $0x48] sm:$0xff]   ;;  %v1969_v52 = vld [vmem:[%s2629_s5 + $0x50] sm:$0xff]  }
 0x20d   :  { %v581_v58 = vpack.c.bf16 %v534_v55, %v533_v54  ;;  %v1840_v59 = vpop.f32.mrb[4].mxu1  ;;  %v1971_v54 = vld [vmem:[%s2629_s5 + $0x60] sm:$0xff]   ;;  %v1972_v55 = vld [vmem:[%s2629_s5 + $0x68] sm:$0xff]  }
 0x20e   :  { %v495_v60 = vadd.f32 %v1840_v59, %v324_v41  ;;  %v486_v61 = vpop.f32.mrb[5].mxu1  ;;  %v2483_v59 = vpop.permute.xlu1 %708 }
 0x20f   :  { %v487_v62 = vadd.f32 %v486_v61, %v314_v39  ;;  %v1841_v63 = vpop.f32.mrb[6].mxu1  ;;  %1850 = vmatprep.subr.bf16.mxu1 %v581_v58 }
 0x210   :  { %v498_v0 = vadd.f32 %v1841_v63, %v329_v45  ;;  %v489_v1 = vpop.f32.mrb[7].mxu1  ;;  %1851 = vmatpush3.bf16.msra.mxu1 %v581_v58  ;;  %v539_v4 = vmax.f32 %v495_v60, 0.0  ;;  %v1962_v45 = vld [vmem:[%s2629_s5 + $0x18] sm:$0xff]   ;;  %v2481_v58 = vpop.permute.xlu0 %703 }
 0x211   :  { %v490_v3 = vadd.f32 %v489_v1, %v319_v40  ;;  %1852 = vmatprep.subr.bf16.mxu1 %v582_v56  ;;  %v537_v7 = vmax.f32 %v487_v62, 0.0  ;;  %v1977_v62 = vld [vmem:[%s2630_s7 + $0x4] ss:$8 sps:$4 sm:$0xff]  }
 0x212   :  { %v540_v5 = vmax.f32 %v498_v0, 0.0  ;;  %v629_v61 = vpop.permute.xlu1 %628  ;;  %1310 = vmatprep.mubr.bf16.mxu0 %v1977_v62 }
 0x213   :  { %v538_v8 = vmax.f32 %v490_v3, 0.0 }
 0x214   :  { %v584_v9 = vpack.c.bf16 %v540_v5, %v539_v4  ;;  %1853 = vmatpush3.bf16.msra.mxu1 %v582_v56  ;;  %v1973_v56 = vld [vmem:[%s2629_s5 + $0x70] sm:$0xff]   ;;  %v624_v60 = vpop.permute.xlu0 %623 }
 0x215   :  { %v583_v10 = vpack.c.bf16 %v538_v8, %v537_v7  ;;  %v1844_v11 = vpop.f32.mrb[8].mxu1 }
 0x216   :  { %v511_v12 = vadd.f32 %v1844_v11, %v344_v2  ;;  %v502_v13 = vpop.f32.mrb[9].mxu1  ;;  %v2490_v0 = vpop.permute.xlu1 %718 }
 0x217   :  { %v503_v15 = vadd.f32 %v502_v13, %v334_v53  ;;  %v1845_v16 = vpop.f32.mrb[10].mxu1  ;;  %1854 = vmatprep.subr.bf16.mxu1 %v583_v10  ;;  %v1970_v53 = vld [vmem:[%s2629_s5 + $0x58] sm:$0xff]  }
 0x218   :  { %v514_v17 = vadd.f32 %v1845_v16, %v349_v6  ;;  %v505_v18 = vpop.f32.mrb[11].mxu1  ;;  %1855 = vmatpush3.bf16.msra.mxu1 %v583_v10  ;;  %v543_v21 = vmax.f32 %v511_v12, 0.0  ;;  %v2488_v63 = vpop.permute.xlu0 %713 }
 0x219   :  { %v506_v20 = vadd.f32 %v505_v18, %v339_v57  ;;  %1856 = vmatprep.subr.bf16.mxu1 %v584_v9  ;;  %v541_v23 = vmax.f32 %v503_v15, 0.0  ;;  %v1974_v57 = vld [vmem:[%s2629_s5 + $0x78] sm:$0xff]  }
 0x21a   :  { %v544_v22 = vmax.f32 %v514_v17, 0.0  ;;  %v639_v2 = vpop.permute.xlu1 %638 }
 0x21b   :  { %v542_v24 = vmax.f32 %v506_v20, 0.0 }
 0x21c   :  { %v586_v25 = vpack.c.bf16 %v544_v22, %v543_v21  ;;  %1857 = vmatpush3.bf16.msra.mxu1 %v584_v9  ;;  %v634_v1 = vpop.permute.xlu0 %633 }
 0x21d   :  { %v585_v27 = vpack.c.bf16 %v542_v24, %v541_v23  ;;  %v1848_v28 = vpop.f32.mrb[12].mxu1 }
 0x21e   :  { %v527_v29 = vadd.f32 %v1848_v28, %v364_v26  ;;  %v518_v30 = vpop.f32.mrb[13].mxu1  ;;  %v2494_v4 = vpop.permute.xlu1 %728 }
 0x21f   :  { %v519_v32 = vadd.f32 %v518_v30, %v354_v14  ;;  %v1849_v33 = vpop.f32.mrb[14].mxu1  ;;  %1858 = vmatprep.subr.bf16.mxu1 %v585_v27 }
 0x220   :  { %v530_v34 = vadd.f32 %v1849_v33, %v369_v31  ;;  %v521_v35 = vpop.f32.mrb[15].mxu1  ;;  %1859 = vmatpush3.bf16.msra.mxu1 %v585_v27  ;;  %v547_v37 = vmax.f32 %v527_v29, 0.0  ;;  %v2492_v3 = vpop.permute.xlu0 %723 }
 0x221   :  { %v522_v36 = vadd.f32 %v521_v35, %v359_v19  ;;  %1860 = vmatprep.subr.bf16.mxu1 %v586_v25  ;;  %v545_v39 = vmax.f32 %v519_v32, 0.0 }
 0x222   :  { %v548_v38 = vmax.f32 %v530_v34, 0.0  ;;  %v649_v6 = vpop.permute.xlu1 %648 }
 0x223   :  { %v546_v40 = vmax.f32 %v522_v36, 0.0 }
 0x224   :  { %v588_v41 = vpack.c.bf16 %v548_v38, %v547_v37  ;;  %1861 = vmatpush3.bf16.msra.mxu1 %v586_v25  ;;  %v644_v5 = vpop.permute.xlu0 %643 }
 0x225   :  { %v587_v42 = vpack.c.bf16 %v546_v40, %v545_v39 }
 0x226   :  { %v2498_v8 = vpop.permute.xlu1 %738 }
 0x227   :  { %1862 = vmatprep.subr.bf16.mxu1 %v587_v42 }
 0x228   :  { %1863 = vmatpush3.bf16.msra.mxu1 %v587_v42  ;;  %v2496_v7 = vpop.permute.xlu0 %733 }
 0x229   :  { %1864 = vmatprep.subr.bf16.mxu1 %v588_v41 }
 0x22a   :  { %v659_v10 = vpop.permute.xlu1 %658 }
 0x22c   :  { %1865 = vmatpush3.bf16.msra.mxu1 %v588_v41  ;;  %v654_v9 = vpop.permute.xlu0 %653 }
 0x22e   :  { %v2502_v12 = vpop.permute.xlu1 %748 }
 0x22f   :  { %1867 = vmatmul.mubr.bf16.vlgmr.msra.gmra.mrb[16].mxu1 %v1960_v43 }
 0x230   :  { %1870 = vmatprep.mubr.bf16.mxu1 %v1961_v44  ;;  %v2500_v11 = vpop.permute.xlu0 %743 }
 0x232   :  { %v669_v14 = vpop.permute.xlu1 %668 }
 0x234   :  { %v664_v13 = vpop.permute.xlu0 %663 }
 0x236   :  { %v2506_v16 = vpop.permute.xlu1 %758 }
 0x237   :  { %1871 = vmatmul.mubr.bf16.gmra.mrb[20].mxu1 %v1962_v45 }
 0x238   :  { %1874 = vmatprep.mubr.bf16.mxu1 %v1963_v46  ;;  %v2504_v15 = vpop.permute.xlu0 %753 }
 0x23a   :  { %v679_v21 = vpop.permute.xlu1 %678 }
 0x23c   :  { %v674_v17 = vpop.permute.xlu0 %673 }
 0x23e   :  { %v2512_v33 = vpop.permute.xlu1 %768 }
 0x23f   :  { %1875 = vmatmul.mubr.bf16.gmra.mrb[24].mxu1 %v1964_v47 }
 0x240   :  { %1878 = vmatprep.mubr.bf16.mxu1 %v1965_v48  ;;  %v2508_v29 = vpop.permute.xlu0 %763 }
 0x242   :  { %v689_v46 = vpop.permute.xlu1 %688 }
 0x244   :  { %v684_v42 = vpop.permute.xlu0 %683 }
 0x247   :  { %1879 = vmatmul.mubr.bf16.gmra.mrb[28].mxu1 %v1966_v49 }
 0x248   :  { %1882 = vmatprep.mubr.bf16.mxu1 %v1967_v50 }
 0x24f   :  { %1883 = vmatmul.mubr.bf16.gmra.mrb[32].mxu1 %v1968_v51 }
 0x250   :  { %1886 = vmatprep.mubr.bf16.mxu1 %v1969_v52 }
 0x257   :  { %1887 = vmatmul.mubr.bf16.gmra.mrb[36].mxu1 %v1970_v53 }
 0x258   :  { %1890 = vmatprep.mubr.bf16.mxu1 %v1971_v54  ;;  %v2520_v54 = vpop.permute.xlu0 %773 }
 0x25f   :  { %1891 = vmatmul.mubr.bf16.gmra.mrb[40].mxu1 %v1972_v55 }
 0x260   :  { %1894 = vmatprep.mubr.bf16.mxu1 %v1973_v56 }
 0x267   :  { %1895 = vmatmul.mubr.bf16.gmra.mrb[44].mxu1 %v1974_v57 }
 0x302   :  { %v1868_v18 = vpop.f32.mrb[16].mxu1 }
 0x303   :  { %v920_v19 = vadd.f32 %v1868_v18, %v634_v1  ;;  %v911_v20 = vpop.f32.mrb[17].mxu1 }
 0x304   :  { %v912_v22 = vadd.f32 %v911_v20, %v624_v60  ;;  %v1869_v23 = vpop.f32.mrb[18].mxu1 }
 0x305   :  { %v923_v24 = vadd.f32 %v1869_v23, %v639_v2  ;;  %v914_v25 = vpop.f32.mrb[19].mxu1  ;;  %v1040_v27 = vmax.f32 %v920_v19, 0.0 }
 0x306   :  { %v915_v26 = vadd.f32 %v914_v25, %v629_v61  ;;  %v1038_v30 = vmax.f32 %v912_v22, 0.0  ;;  %v2522_v61 = vpop.permute.xlu1 %778 }
 0x307   :  { %v1041_v28 = vmax.f32 %v923_v24, 0.0 }
 0x308   :  { %v1039_v31 = vmax.f32 %v915_v26, 0.0 }
 0x309   :  { %v2510_v32 = vpack.c.bf16 %v1041_v28, %v1040_v27 }
 0x30a   :  { %v2514_v34 = vpack.c.bf16 %v1039_v31, %v1038_v30  ;;  %v1872_v35 = vpop.f32.mrb[20].mxu1  ;;  %v699_v22 = vpop.permute.xlu1 %698 }
 0x30b   :  { %v936_v36 = vadd.f32 %v1872_v35, %v654_v9  ;;  %v927_v37 = vpop.f32.mrb[21].mxu1 }
 0x30c   :  { %v928_v38 = vadd.f32 %v927_v37, %v644_v5  ;;  %v1873_v39 = vpop.f32.mrb[22].mxu1 }
 0x30d   :  { %v939_v40 = vadd.f32 %v1873_v39, %v659_v10  ;;  %v930_v41 = vpop.f32.mrb[23].mxu1  ;;  %v1044_v44 = vmax.f32 %v936_v36, 0.0  ;;  %v694_v10 = vpop.permute.xlu0 %693 }
 0x30e   :  { %v931_v43 = vadd.f32 %v930_v41, %v649_v6  ;;  %v1042_v47 = vmax.f32 %v928_v38, 0.0 }
 0x30f   :  { %v1045_v45 = vmax.f32 %v939_v40, 0.0 }
 0x310   :  { %v1043_v48 = vmax.f32 %v931_v43, 0.0 }
 0x311   :  { %v2516_v49 = vpack.c.bf16 %v1045_v45, %v1044_v44 }
 0x312   :  { %v2518_v50 = vpack.c.bf16 %v1043_v48, %v1042_v47  ;;  %v1876_v51 = vpop.f32.mrb[24].mxu1 }
 0x313   :  { %v952_v52 = vadd.f32 %v1876_v51, %v674_v17  ;;  %v943_v53 = vpop.f32.mrb[25].mxu1 }
 0x314   :  { %v944_v55 = vadd.f32 %v943_v53, %v664_v13  ;;  %v1877_v56 = vpop.f32.mrb[26].mxu1 }
 0x315   :  { %v955_v57 = vadd.f32 %v1877_v56, %v679_v21  ;;  %v946_v60 = vpop.f32.mrb[27].mxu1  ;;  %v1048_v1 = vmax.f32 %v952_v52, 0.0 }
 0x316   :  { %v947_v62 = vadd.f32 %v946_v60, %v669_v14  ;;  %v1046_v5 = vmax.f32 %v944_v55, 0.0 }
 0x317   :  { %v1049_v2 = vmax.f32 %v955_v57, 0.0 }
 0x318   :  { %v1047_v6 = vmax.f32 %v947_v62, 0.0 }
 0x319   :  { %v2524_v9 = vpack.c.bf16 %v1049_v2, %v1048_v1 }
 0x31a   :  { %v2526_v18 = vpack.c.bf16 %v1047_v6, %v1046_v5  ;;  %v1880_v17 = vpop.f32.mrb[28].mxu1 }
 0x31b   :  { %v968_v19 = vadd.f32 %v1880_v17, %v694_v10  ;;  %v959_v20 = vpop.f32.mrb[29].mxu1 }
 0x31c   :  { %v960_v13 = vadd.f32 %v959_v20, %v684_v42  ;;  %v1881_v23 = vpop.f32.mrb[30].mxu1 }
 0x31d   :  { %v971_v21 = vadd.f32 %v1881_v23, %v699_v22  ;;  %v962_v24 = vpop.f32.mrb[31].mxu1  ;;  %v1052_v26 = vmax.f32 %v968_v19, 0.0 }
 0x31e   :  { %v963_v25 = vadd.f32 %v962_v24, %v689_v46  ;;  %v1050_v27 = vmax.f32 %v960_v13, 0.0 }
 0x31f   :  { %v1053_v14 = vmax.f32 %v971_v21, 0.0 }
 0x320   :  { %v1051_v28 = vmax.f32 %v963_v25, 0.0 }
 0x321   :  { %v2528_v30 = vpack.c.bf16 %v1053_v14, %v1052_v26 }
 0x322   :  { %v2530_v31 = vpack.c.bf16 %v1051_v28, %v1050_v27  ;;  %v1884_v35 = vpop.f32.mrb[32].mxu1  ;;  %v1984_v28 = vld [vmem:[%s2630_s7 + $0x34] ss:$8 sps:$4 sm:$0xff]  }
 0x323   :  { %v984_v36 = vadd.f32 %v1884_v35, %v2488_v63  ;;  %v975_v37 = vpop.f32.mrb[33].mxu1  ;;  %v1989_v35 = vld [vmem:[%s2630_s7 + $0x40] ss:$8 sps:$4 sm:$0xff]  }
 0x324   :  { %v976_v38 = vadd.f32 %v975_v37, %v2481_v58  ;;  %v1885_v39 = vpop.f32.mrb[34].mxu1  ;;  %v1992_v37 = vld [vmem:[%s2630_s7 + $0x50] ss:$8 sps:$4 sm:$0xff]  }
 0x325   :  { %v987_v40 = vadd.f32 %v1885_v39, %v2490_v0  ;;  %v978_v41 = vpop.f32.mrb[35].mxu1  ;;  %v1056_v43 = vmax.f32 %v984_v36, 0.0  ;;  %v1990_v36 = vld [vmem:[%s2630_s7 + $0x54] ss:$8 sps:$4 sm:$0xff]   ;;  %v1995_v39 = vld [vmem:[%s2630_s7 + $0x60] ss:$8 sps:$4 sm:$0xff]  }
 0x326   :  { %v979_v42 = vadd.f32 %v978_v41, %v2483_v59  ;;  %v1054_v45 = vmax.f32 %v976_v38, 0.0  ;;  %v1993_v38 = vld [vmem:[%s2630_s7 + $0x64] ss:$8 sps:$4 sm:$0xff]   ;;  %v1998_v41 = vld [vmem:[%s2630_s7 + $0x70] ss:$8 sps:$4 sm:$0xff]  }
 0x327   :  { %v1057_v44 = vmax.f32 %v987_v40, 0.0  ;;  %v1996_v40 = vld [vmem:[%s2630_s7 + $0x74] ss:$8 sps:$4 sm:$0xff]  }
 0x328   :  { %v1055_v46 = vmax.f32 %v979_v42, 0.0  ;;  %v1999_v42 = vld [vmem:[%s2631_s9] sm:$0xff]  }
 0x329   :  { %v1095_v47 = vpack.c.bf16 %v1057_v44, %v1056_v43  ;;  %1914 = vmatprep.mubr.bf16.mxu1 %v1999_v42 }
 0x32a   :  { %v1094_v48 = vpack.c.bf16 %v1055_v46, %v1054_v45  ;;  %v1888_v51 = vpop.f32.mrb[36].mxu1 }
 0x32b   :  { %v1000_v52 = vadd.f32 %v1888_v51, %v2496_v7  ;;  %v991_v53 = vpop.f32.mrb[37].mxu1 }
 0x32c   :  { %v992_v63 = vadd.f32 %v991_v53, %v2492_v3  ;;  %v1889_v55 = vpop.f32.mrb[38].mxu1  ;;  %1721 = vmatprep.subr.bf16.mxu0 %v1094_v48  ;;  %v1126_v53 = vpop.permute.xlu1 %1125 }
 0x32d   :  { %v1003_v58 = vadd.f32 %v1889_v55, %v2498_v8  ;;  %v994_v0 = vpop.f32.mrb[39].mxu1  ;;  %1722 = vmatpush3.bf16.msra.mxu0 %v2514_v34  ;;  %v1060_v56 = vmax.f32 %v1000_v52, 0.0 }
 0x32e   :  { %v995_v59 = vadd.f32 %v994_v0, %v2494_v4  ;;  %1723 = vmatprep.subr.bf16.mxu0 %v1095_v47  ;;  %v1058_v60 = vmax.f32 %v992_v63, 0.0  ;;  %v1121_v47 = vpop.permute.xlu0 %1120 }
 0x32f   :  { %v1061_v57 = vmax.f32 %v1003_v58, 0.0 }
 0x330   :  { %v1059_v62 = vmax.f32 %v995_v59, 0.0 }
 0x331   :  { %v1097_v1 = vpack.c.bf16 %v1061_v57, %v1060_v56  ;;  %1724 = vmatpush3.bf16.msra.mxu0 %v2510_v32 }
 0x332   :  { %v1096_v7 = vpack.c.bf16 %v1059_v62, %v1058_v60  ;;  %v1892_v2 = vpop.f32.mrb[40].mxu1  ;;  %v1131_v62 = vpop.permute.xlu0 %1130 }
 0x333   :  { %v1016_v3 = vadd.f32 %v1892_v2, %v2504_v15  ;;  %v1007_v5 = vpop.f32.mrb[41].mxu1 }
 0x334   :  { %v1008_v8 = vadd.f32 %v1007_v5, %v2500_v11  ;;  %v1893_v6 = vpop.f32.mrb[42].mxu1  ;;  %1725 = vmatprep.subr.bf16.mxu0 %v1096_v7 }
 0x335   :  { %v1019_v34 = vadd.f32 %v1893_v6, %v2506_v16  ;;  %v1010_v4 = vpop.f32.mrb[43].mxu1  ;;  %1726 = vmatpush3.bf16.msra.mxu0 %v2518_v50  ;;  %v1064_v17 = vmax.f32 %v1016_v3, 0.0  ;;  %v1136_v3 = vpop.permute.xlu1 %1135 }
 0x336   :  { %v1011_v10 = vadd.f32 %v1010_v4, %v2502_v12  ;;  %1727 = vmatprep.subr.bf16.mxu0 %v1097_v1  ;;  %v1062_v32 = vmax.f32 %v1008_v8, 0.0 }
 0x337   :  { %v1065_v19 = vmax.f32 %v1019_v34, 0.0 }
 0x338   :  { %v1063_v20 = vmax.f32 %v1011_v10, 0.0 }
 0x339   :  { %v1099_v22 = vpack.c.bf16 %v1065_v19, %v1064_v17  ;;  %1728 = vmatpush3.bf16.msra.mxu0 %v2516_v49 }
 0x33a   :  { %v1098_v15 = vpack.c.bf16 %v1063_v20, %v1062_v32  ;;  %v1896_v13 = vpop.f32.mrb[44].mxu1  ;;  %v1141_v32 = vpop.permute.xlu0 %1140 }
 0x33b   :  { %v1032_v11 = vadd.f32 %v1896_v13, %v2520_v54  ;;  %v1023_v23 = vpop.f32.mrb[45].mxu1  ;;  %v1146_v13 = vpop.permute.xlu1 %1145 }
 0x33c   :  { %v1024_v16 = vadd.f32 %v1023_v23, %v2508_v29  ;;  %v1897_v21 = vpop.f32.mrb[46].mxu1  ;;  %1729 = vmatprep.subr.bf16.mxu0 %v1098_v15  ;;  %v1975_v29 = vld [vmem:[%s2630_s7] ss:$8 sps:$4 sm:$0xff]  }
 0x33d   :  { %v1035_v50 = vadd.f32 %v1897_v21, %v2522_v61  ;;  %v1026_v12 = vpop.f32.mrb[47].mxu1  ;;  %1730 = vmatpush3.bf16.msra.mxu0 %v2526_v18  ;;  %v1068_v25 = vmax.f32 %v1032_v11, 0.0  ;;  %v1980_v61 = vld [vmem:[%s2630_s7 + $0x10] ss:$8 sps:$4 sm:$0xff]   ;;  %v1983_v18 = vld [vmem:[%s2630_s7 + $0x20] ss:$8 sps:$4 sm:$0xff]  }
 0x33e   :  { %v1027_v24 = vadd.f32 %v1026_v12, %v2512_v33  ;;  %1731 = vmatprep.subr.bf16.mxu0 %v1099_v22  ;;  %v1066_v49 = vmax.f32 %v1024_v16, 0.0  ;;  %v1978_v33 = vld [vmem:[%s2630_s7 + $0x14] ss:$8 sps:$4 sm:$0xff]  }
 0x33f   :  { %v1069_v26 = vmax.f32 %v1035_v50, 0.0 }
 0x340   :  { %v1067_v14 = vmax.f32 %v1027_v24, 0.0 }
 0x341   :  { %v1101_v27 = vpack.c.bf16 %v1069_v26, %v1068_v25  ;;  %1732 = vmatpush3.bf16.msra.mxu0 %v2524_v9  ;;  %v1981_v9 = vld [vmem:[%s2630_s7 + $0x24] ss:$8 sps:$4 sm:$0xff]   ;;  %v1151_v26 = vpop.permute.xlu0 %1150 }
 0x342   :  { %v1100_v54 = vpack.c.bf16 %v1067_v14, %v1066_v49 }
 0x344   :  { %1733 = vmatprep.subr.bf16.mxu0 %v1100_v54  ;;  %v1156_v54 = vpop.permute.xlu1 %1155 }
 0x345   :  { %1734 = vmatpush3.bf16.msra.mxu0 %v2530_v31  ;;  %v1987_v31 = vld [vmem:[%s2630_s7 + $0x44] ss:$8 sps:$4 sm:$0xff]  }
 0x346   :  { %1735 = vmatprep.subr.bf16.mxu0 %v1101_v27 }
 0x349   :  { %1736 = vmatpush3.bf16.msra.mxu0 %v2528_v30  ;;  %v1986_v30 = vld [vmem:[%s2630_s7 + $0x30] ss:$8 sps:$4 sm:$0xff]  }
 0x34c   :  { %1311 = vmatmul.mubr.bf16.vlgmr.msra.gmra.mrb[8].mxu0 %v1975_v29 }
 0x34d   :  { %1318 = vmatprep.mubr.bf16.mxu0 %v1978_v33 }
 0x354   :  { %1319 = vmatmul.mubr.bf16.gmra.mrb[12].mxu0 %v1980_v61 }
 0x355   :  { %1326 = vmatprep.mubr.bf16.mxu0 %v1981_v9 }
 0x35c   :  { %1327 = vmatmul.mubr.bf16.gmra.mrb[16].mxu0 %v1983_v18 }
 0x35d   :  { %1334 = vmatprep.mubr.bf16.mxu0 %v1984_v28 }
 0x364   :  { %1335 = vmatmul.mubr.bf16.gmra.mrb[20].mxu0 %v1986_v30 }
 0x365   :  { %1342 = vmatprep.mubr.bf16.mxu0 %v1987_v31 }
 0x36c   :  { %1343 = vmatmul.mubr.bf16.gmra.mrb[24].mxu0 %v1989_v35  ;;  %v1161_v35 = vpop.permute.xlu0 %1160 }
 0x36d   :  { %1350 = vmatprep.mubr.bf16.mxu0 %v1990_v36 }
 0x374   :  { %1351 = vmatmul.mubr.bf16.gmra.mrb[28].mxu0 %v1992_v37 }
 0x375   :  { %1358 = vmatprep.mubr.bf16.mxu0 %v1993_v38 }
 0x37c   :  { %1359 = vmatmul.mubr.bf16.gmra.mrb[32].mxu0 %v1995_v39  ;;  %v1166_v39 = vpop.permute.xlu1 %1165 }
 0x37d   :  { %1366 = vmatprep.mubr.bf16.mxu0 %v1996_v40 }
 0x384   :  { %1367 = vmatmul.mubr.bf16.gmra.mrb[36].mxu0 %v1998_v41 }
 0x41f   :  { %v1737_v43 = vpop.f32.mrb[8].mxu0 }
 0x420   :  { %v1738_v44 = vpop.f32.mrb[9].mxu0 }
 0x421   :  { %v1739_v45 = vadd.f32 %v1738_v44, %v1737_v43  ;;  %v1740_v46 = vpop.f32.mrb[10].mxu0 }
 0x422   :  { %v1741_v48 = vpop.f32.mrb[11].mxu0 }
 0x423   :  { %v1313_v51 = vadd.f32 %v1739_v45, %v1121_v47  ;;  %v1742_v52 = vadd.f32 %v1741_v48, %v1740_v46  ;;  %v1171_v48 = vpop.permute.xlu0 %1170 }
 0x425   :  { %v1316_v63 = vadd.f32 %v1742_v52, %v1126_v53  ;;  %v1375_v55 = vmax.f32 %v1313_v51, 0.0 }
 0x427   :  { %v1376_v58 = vmax.f32 %v1316_v63, 0.0  ;;  %v1743_v0 = vpop.f32.mrb[12].mxu0  ;;  %v1176_v63 = vpop.permute.xlu1 %1175 }
 0x428   :  { %v1744_v59 = vpop.f32.mrb[13].mxu0 }
 0x429   :  { %v1745_v56 = vadd.f32 %v1744_v59, %v1743_v0  ;;  %v1746_v57 = vpop.f32.mrb[14].mxu0  ;;  %v1399_v60 = vpack.c.bf16 %v1376_v58, %v1375_v55 }
 0x42a   :  { %v1747_v1 = vpop.f32.mrb[15].mxu0 }
 0x42b   :  { %v1321_v7 = vadd.f32 %v1745_v56, %v1131_v62  ;;  %v1748_v2 = vadd.f32 %v1747_v1, %v1746_v57  ;;  %1898 = vmatprep.subr.bf16.mxu1 %v1399_v60  ;;  %v1181_v1 = vpop.permute.xlu0 %1180 }
 0x42c   :  { %1899 = vmatpush3.bf16.msra.mxu1 %v1399_v60 }
 0x42d   :  { %v1324_v5 = vadd.f32 %v1748_v2, %v1136_v3  ;;  %v1377_v8 = vmax.f32 %v1321_v7, 0.0 }
 0x42f   :  { %v1378_v6 = vmax.f32 %v1324_v5, 0.0  ;;  %v1749_v34 = vpop.f32.mrb[16].mxu0  ;;  %v1186_v5 = vpop.permute.xlu1 %1185 }
 0x430   :  { %v1750_v4 = vpop.f32.mrb[17].mxu0 }
 0x431   :  { %v1751_v10 = vadd.f32 %v1750_v4, %v1749_v34  ;;  %v1752_v17 = vpop.f32.mrb[18].mxu0  ;;  %v1400_v19 = vpack.c.bf16 %v1378_v6, %v1377_v8 }
 0x432   :  { %v1753_v20 = vpop.f32.mrb[19].mxu0 }
 0x433   :  { %v1329_v22 = vadd.f32 %v1751_v10, %v1141_v32  ;;  %v1754_v15 = vadd.f32 %v1753_v20, %v1752_v17  ;;  %1900 = vmatprep.subr.bf16.mxu1 %v1400_v19  ;;  %v1191_v20 = vpop.permute.xlu0 %1190 }
 0x434   :  { %1901 = vmatpush3.bf16.msra.mxu1 %v1400_v19 }
 0x435   :  { %v1332_v11 = vadd.f32 %v1754_v15, %v1146_v13  ;;  %v1379_v23 = vmax.f32 %v1329_v22, 0.0 }
 0x437   :  { %v1380_v16 = vmax.f32 %v1332_v11, 0.0  ;;  %v1755_v21 = vpop.f32.mrb[20].mxu0  ;;  %v1196_v11 = vpop.permute.xlu1 %1195 }
 0x438   :  { %v1756_v50 = vpop.f32.mrb[21].mxu0 }
 0x439   :  { %v1757_v12 = vadd.f32 %v1756_v50, %v1755_v21  ;;  %v1758_v24 = vpop.f32.mrb[22].mxu0  ;;  %v1401_v25 = vpack.c.bf16 %v1380_v16, %v1379_v23 }
 0x43a   :  { %v1759_v49 = vpop.f32.mrb[23].mxu0 }
 0x43b   :  { %v1337_v14 = vadd.f32 %v1757_v12, %v1151_v26  ;;  %v1760_v27 = vadd.f32 %v1759_v49, %v1758_v24  ;;  %1902 = vmatprep.subr.bf16.mxu1 %v1401_v25  ;;  %v2000_v12 = vld [vmem:[%s2631_s9 + $0x8] sm:$0xff]   ;;  %v2001_v24 = vld [vmem:[%s2631_s9 + $0x10] sm:$0xff]   ;;  %v2006_v26 = vmov 0.0   ;;  %v1418_v49 = vpop.permute.xlu0 %1417 }
 0x43c   :  { %1903 = vmatpush3.bf16.msra.mxu1 %v1401_v25  ;;  %v2002_v25 = vld [vmem:[%s2631_s9 + $0x18] sm:$0xff]  }
 0x43d   :  { %v1340_v29 = vadd.f32 %v1760_v27, %v1156_v54  ;;  %v1381_v33 = vmax.f32 %v1337_v14, 0.0  ;;  %v1423_v14 = vpop.permute.xlu1 %1422 }
 0x43f   :  { %v1382_v61 = vmax.f32 %v1340_v29, 0.0  ;;  %v1761_v9 = vpop.f32.mrb[24].mxu0  ;;  %v1428_v27 = vpop.permute.xlu0 %1427 }
 0x440   :  { %v1762_v18 = vpop.f32.mrb[25].mxu0 }
 0x441   :  { %v1763_v28 = vadd.f32 %v1762_v18, %v1761_v9  ;;  %v1764_v30 = vpop.f32.mrb[26].mxu0  ;;  %v1402_v31 = vpack.c.bf16 %v1382_v61, %v1381_v33  ;;  %v1433_v54 = vpop.permute.xlu1 %1432 }
 0x442   :  { %v1765_v36 = vpop.f32.mrb[27].mxu0 }
 0x443   :  { %v1345_v37 = vadd.f32 %v1763_v28, %v1161_v35  ;;  %v1766_v38 = vadd.f32 %v1765_v36, %v1764_v30  ;;  %1904 = vmatprep.subr.bf16.mxu1 %v1402_v31  ;;  %v1438_v9 = vpop.permute.xlu0 %1437 }
 0x444   :  { %1905 = vmatpush3.bf16.msra.mxu1 %v1402_v31 }
 0x445   :  { %v1348_v40 = vadd.f32 %v1766_v38, %v1166_v39  ;;  %v1383_v41 = vmax.f32 %v1345_v37, 0.0  ;;  %v1443_v35 = vpop.permute.xlu1 %1442 }
 0x447   :  { %v1384_v42 = vmax.f32 %v1348_v40, 0.0  ;;  %v1767_v43 = vpop.f32.mrb[28].mxu0 }
 0x448   :  { %v1768_v44 = vpop.f32.mrb[29].mxu0 }
 0x449   :  { %v1769_v45 = vadd.f32 %v1768_v44, %v1767_v43  ;;  %v1770_v46 = vpop.f32.mrb[30].mxu0  ;;  %v1403_v47 = vpack.c.bf16 %v1384_v42, %v1383_v41  ;;  %v1448_v42 = vpop.permute.xlu0 %1447 }
 0x44a   :  { %v1771_v51 = vpop.f32.mrb[31].mxu0 }
 0x44b   :  { %v1353_v52 = vadd.f32 %v1769_v45, %v1171_v48  ;;  %v1772_v53 = vadd.f32 %v1771_v51, %v1770_v46  ;;  %1906 = vmatprep.subr.bf16.mxu1 %v1403_v47 }
 0x44c   :  { %1907 = vmatpush3.bf16.msra.mxu1 %v1403_v47  ;;  %v1453_v47 = vpop.permute.xlu1 %1452 }
 0x44d   :  { %v1356_v55 = vadd.f32 %v1772_v53, %v1176_v63  ;;  %v1385_v58 = vmax.f32 %v1353_v52, 0.0 }
 0x44f   :  { %v1386_v0 = vmax.f32 %v1356_v55, 0.0  ;;  %v1773_v59 = vpop.f32.mrb[32].mxu0 }
 0x450   :  { %v1774_v56 = vpop.f32.mrb[33].mxu0 }
 0x451   :  { %v1775_v57 = vadd.f32 %v1774_v56, %v1773_v59  ;;  %v1776_v60 = vpop.f32.mrb[34].mxu0  ;;  %v1404_v62 = vpack.c.bf16 %v1386_v0, %v1385_v58 }
 0x452   :  { %v1777_v7 = vpop.f32.mrb[35].mxu0 }
 0x453   :  { %v1361_v2 = vadd.f32 %v1775_v57, %v1181_v1  ;;  %v1778_v3 = vadd.f32 %v1777_v7, %v1776_v60  ;;  %1908 = vmatprep.subr.bf16.mxu1 %v1404_v62  ;;  %v1552_v60 = vld [vmem:[%s2632_s11] sm:$0x7] }
 0x454   :  { %1909 = vmatpush3.bf16.msra.mxu1 %v1404_v62  ;;  %v1561_v62 = vpop.permute.xlu0 %1560 }
 0x455   :  { %v1364_v8 = vadd.f32 %v1778_v3, %v1186_v5  ;;  %v1387_v6 = vmax.f32 %v1361_v2, 0.0 }
 0x457   :  { %v1388_v34 = vmax.f32 %v1364_v8, 0.0  ;;  %v1779_v4 = vpop.f32.mrb[36].mxu0 }
 0x458   :  { %v1780_v10 = vpop.f32.mrb[37].mxu0 }
 0x459   :  { %v1781_v17 = vadd.f32 %v1780_v10, %v1779_v4  ;;  %v1782_v19 = vpop.f32.mrb[38].mxu0  ;;  %v1405_v32 = vpack.c.bf16 %v1388_v34, %v1387_v6 }
 0x45a   :  { %v1783_v22 = vpop.f32.mrb[39].mxu0 }
 0x45b   :  { %v1369_v15 = vadd.f32 %v1781_v17, %v1191_v20  ;;  %v1784_v13 = vadd.f32 %v1783_v22, %v1782_v19  ;;  %1910 = vmatprep.subr.bf16.mxu1 %v1405_v32 }
 0x45c   :  { %1911 = vmatpush3.bf16.msra.mxu1 %v1405_v32 }
 0x45d   :  { %v1372_v23 = vadd.f32 %v1784_v13, %v1196_v11  ;;  %v1389_v16 = vmax.f32 %v1369_v15, 0.0 }
 0x45f   :  { %v1390_v21 = vmax.f32 %v1372_v23, 0.0 }
 0x461   :  { %v1406_v50 = vpack.c.bf16 %v1390_v21, %v1389_v16 }
 0x463   :  { %1912 = vmatprep.subr.bf16.mxu1 %v1406_v50 }
 0x464   :  { %1913 = vmatpush3.bf16.msra.mxu1 %v1406_v50 }
 0x465   :  { %1922 = vmatprep.subr.bf16.mxu1 %v2006_v26 }
 0x467   :  { %1915 = vmatmul.mubr.bf16.vlgmr.msra.gmra.mrb[48].mxu1 %v2000_v12 }
 0x468   :  { %1918 = vmatprep.mubr.bf16.mxu1 %v2001_v24 }
 0x46f   :  { %1919 = vmatmul.mubr.bf16.gmra.mrb[52].mxu1 %v2002_v25 }
 0x470   :  { %1930 = vmatprep.mubr.msk.bf16.mxu1 %vm2007_vm2, %v2006_v26 }
 0x53a   :  { %v1916_v29 = vpop.f32.mrb[48].mxu1 }
 0x53b   :  { %v1522_v33 = vadd.f32 %v1916_v29, %v1428_v27  ;;  %v1513_v61 = vpop.f32.mrb[49].mxu1 }
 0x53c   :  { %v1514_v18 = vadd.f32 %v1513_v61, %v1418_v49  ;;  %v1917_v28 = vpop.f32.mrb[50].mxu1 }
 0x53d   :  { %v1525_v30 = vadd.f32 %v1917_v28, %v1433_v54  ;;  %v1516_v31 = vpop.f32.mrb[51].mxu1  ;;  %v1546_v37 = vmax.f32 %v1522_v33, 0.0 }
 0x53e   :  { %v1517_v36 = vadd.f32 %v1516_v31, %v1423_v14  ;;  %v1544_v39 = vmax.f32 %v1514_v18, 0.0 }
 0x53f   :  { %v1547_v38 = vmax.f32 %v1525_v30, 0.0 }
 0x540   :  { %v1545_v40 = vmax.f32 %v1517_v36, 0.0 }
 0x541   :  { %v1554_v41 = vpack.c.bf16 %v1547_v38, %v1546_v37 }
 0x542   :  { %v1553_v43 = vpack.c.bf16 %v1545_v40, %v1544_v39  ;;  %v1920_v44 = vpop.f32.mrb[52].mxu1 }
 0x543   :  { %v1538_v45 = vadd.f32 %v1920_v44, %v1448_v42  ;;  %v1529_v46 = vpop.f32.mrb[53].mxu1 }
 0x544   :  { %v1530_v48 = vadd.f32 %v1529_v46, %v1438_v9  ;;  %v1921_v51 = vpop.f32.mrb[54].mxu1  ;;  %1923 = vmatpush3.bf16.msra.mxu1 %v1553_v43 }
 0x545   :  { %v1541_v52 = vadd.f32 %v1921_v51, %v1453_v47  ;;  %v1532_v53 = vpop.f32.mrb[55].mxu1  ;;  %1924 = vmatprep.subr.bf16.mxu1 %v2006_v26  ;;  %v1550_v55 = vmax.f32 %v1538_v45, 0.0 }
 0x546   :  { %v1533_v63 = vadd.f32 %v1532_v53, %v1443_v35  ;;  %v1548_v0 = vmax.f32 %v1530_v48, 0.0 }
 0x547   :  { %v1551_v58 = vmax.f32 %v1541_v52, 0.0 }
 0x548   :  { %v1549_v59 = vmax.f32 %v1533_v63, 0.0  ;;  %1925 = vmatpush3.bf16.msra.mxu1 %v1554_v41 }
 0x549   :  { %v1556_v56 = vpack.c.bf16 %v1551_v58, %v1550_v55  ;;  %1926 = vmatprep.subr.bf16.mxu1 %v2006_v26 }
 0x54a   :  { %v1555_v57 = vpack.c.bf16 %v1549_v59, %v1548_v0 }
 0x54c   :  { %1927 = vmatpush3.bf16.msra.mxu1 %v1555_v57 }
 0x54d   :  { %1928 = vmatprep.subr.bf16.mxu1 %v2006_v26 }
 0x550   :  { %1929 = vmatpush3.bf16.msra.mxu1 %v1556_v56 }
 0x553   :  { %1931 = vmatmul.mubr.msk.bf16.vlgmr.msra.gmra.mrb[56].mxu1 %vm411_vm1, %v1552_v60 }
 0x626   :  { %v1600_v1 = vpop.f32.mrb[56].mxu1 }
 0x627   :  { %v1601_v7 = vadd.f32 %v1600_v1, %v1561_v62  ;;  %v1932_v2 = vpop.f32.mrb[57].mxu1 }
 0x628   :  { %v1603_v3 = vpop.f32.mrb[58].mxu1 }
 0x629   :  { %2003 = vtanh.f32 %v1601_v7  ;;  %v1933_v5 = vpop.f32.mrb[59].mxu1 }
 0x633   :  { %v2004_v8 = vpop.eup %2003 }
 0x634   :  { %1607 = vst [vmem:[%s2633_s13] sm:$0x1f] %v2004_v8 }

</bundles_post_ra>
